<compile_context>
chip_gen: v6e
topology: v6e:2x2x1
jax: 0.10.0
libtpu: 0.0.40
codegen_flags: <defaults>
</compile_context>

<pallas_src>
import jax
import jax.numpy as jnp
from jax import lax
from jax.experimental import pallas as pl
from jax.experimental.pallas import tpu as pltpu


def _softplus(z):
    # numerically stable softplus: max(z, 0) + log1p(exp(-|z|))
    return jnp.maximum(z, 0.0) + jnp.log1p(jnp.exp(-jnp.abs(z)))


def reg_nll_kernel(x_ref, w1_ref, b1_ref, w2_ref, b2_ref, out_ref):
    # x_ref  : (1, TB)   batch tile, batch on the lane axis
    # w1_ref : (H, 1)    fc1.weight (column), pinned
    # b1_ref : (H, 1)    fc1.bias   (column), pinned
    # w2_ref : (2, H)    fc2.weight, pinned
    # b2_ref : (2, 1)    fc2.bias   (column), pinned
    # out_ref: (2, TB)   row 0 = variance, row 1 = mean
    x = x_ref[...]                                              # (1, TB)
    # fc1 (input feature dim == 1): outer-product broadcast + ReLU on the VPU.
    h = jnp.maximum(w1_ref[...] * x + b1_ref[...], 0.0)         # (H, TB)
    # (F.dropout with training=False is the identity — nothing to do)
    # fc2 on the MXU: (2, H) @ (H, TB) -> (2, TB), f32 accumulation.
    out = jnp.dot(w2_ref[...], h,
                  preferred_element_type=jnp.float32) + b2_ref[...]  # (2, TB)
    # Softplus only on the variance row, selected with a sublane-iota mask,
    # then one unmasked full-tile store.
    is_var_row = lax.broadcasted_iota(jnp.int32, out.shape, 0) == 0
    out_ref[...] = jnp.where(is_var_row, _softplus(out) + 1e-6, out)


def reg_nll_forward(x, w1, b1, w2, b2, *, tb=512):
    """x: (B, 1) f32; w1: (H, 1); b1: (H,); w2: (2, H); b2: (2,).
    Returns (variance, mean), each of shape (B,)."""
    x = jnp.asarray(x, jnp.float32)
    B = x.shape[0]
    H = w1.shape[0]

    LANE = 128
    # Lane-tile size: multiple of 128, no bigger than the 128-rounded batch,
    # default 512 (keeps h = (H, tb) f32 at 16 vregs, no spills).
    b_min = pl.cdiv(B, LANE) * LANE
    tb = max(LANE, (min(tb, b_min) // LANE) * LANE)
    # Guarantee >= 2 grid steps once the padded batch spans >= 2 lane tiles so
    # the "parallel" batch axis shards across both TensorCores on v7x.
    if b_min >= 2 * LANE:
        tb = min(tb, max(LANE, (b_min // (2 * LANE)) * LANE))
    b_pad = pl.cdiv(B, tb) * tb

    # Layout plumbing in the wrapper (free): batch -> lanes, pad to tile.
    x_row = x.reshape(1, B)
    if b_pad != B:
        x_row = jnp.pad(x_row, ((0, 0), (0, b_pad - B)))

    w1c = jnp.asarray(w1, jnp.float32).reshape(H, 1)
    b1c = jnp.asarray(b1, jnp.float32).reshape(H, 1)
    w2c = jnp.asarray(w2, jnp.float32).reshape(2, H)
    b2c = jnp.asarray(b2, jnp.float32).reshape(2, 1)

    grid = (b_pad // tb,)
    packed = pl.pallas_call(
        reg_nll_kernel,
        grid=grid,
        in_specs=[
            pl.BlockSpec((1, tb), lambda i: (0, i)),          # x tile
            pl.BlockSpec((H, 1), lambda i: (0, 0)),           # w1 (pinned)
            pl.BlockSpec((H, 1), lambda i: (0, 0)),           # b1 (pinned)
            pl.BlockSpec((2, H), lambda i: (0, 0)),           # w2 (pinned)
            pl.BlockSpec((2, 1), lambda i: (0, 0)),           # b2 (pinned)
        ],
        out_specs=pl.BlockSpec((2, tb), lambda i: (0, i)),    # packed var/mean
        out_shape=jax.ShapeDtypeStruct((2, b_pad), jnp.float32),
        compiler_params=pltpu.CompilerParams(
            dimension_semantics=("parallel",)),
        cost_estimate=pl.CostEstimate(
            flops=(4 * H + 8) * b_pad,
            transcendentals=4 * b_pad,
            bytes_accessed=12 * b_pad),
    )(x_row, w1c, b1c, w2c, b2c)

    variance = packed[0, :B]
    mean = packed[1, :B]
    return variance, mean


def reg_nll_reference(x, w1, b1, w2, b2):
    h = jnp.maximum(x @ w1.T + b1, 0.0)
    out = h @ w2.T + b2
    variance = jax.nn.softplus(out[:, 0]) + 1e-6
    mean = out[:, 1]
    return variance, mean


if __name__ == "__main__":
    H = 32  # num_hidden

    key = jax.random.PRNGKey(0)
    kx, k1, k2, k3, k4, kx2 = jax.random.split(key, 6)

    # Deterministic synthetic parameters (shapes follow nn.Linear):
    w1 = 0.1 * jax.random.normal(k1, (H, 1), dtype=jnp.float32)   # fc1.weight
    b1 = 0.05 * jax.random.normal(k2, (H,), dtype=jnp.float32)    # fc1.bias
    w2 = 0.1 * jax.random.normal(k3, (2, H), dtype=jnp.float32)   # fc2.weight
    b2 = 0.05 * jax.random.normal(k4, (2,), dtype=jnp.float32)    # fc2.bias

    # Small batch (matches module usage): single padded 128-lane tile.
    x_small = jax.random.normal(kx, (8, 1), dtype=jnp.float32)
    var, mean = reg_nll_forward(x_small, w1, b1, w2, b2)
    jax.block_until_ready((var, mean))
    var_ref, mean_ref = reg_nll_reference(x_small, w1, b1, w2, b2)
    assert var.shape == (8,) and mean.shape == (8,)
    assert jnp.allclose(var, var_ref, atol=1e-5, rtol=1e-5)
    assert jnp.allclose(mean, mean_ref, atol=1e-5, rtol=1e-5)

    # Batch that exercises a multi-step grid plus a padded last tile.
    x_big = jax.random.normal(kx2, (300, 1), dtype=jnp.float32)
    var2, mean2 = reg_nll_forward(x_big, w1, b1, w2, b2)
    jax.block_until_ready((var2, mean2))
    var2_ref, mean2_ref = reg_nll_reference(x_big, w1, b1, w2, b2)
    assert jnp.allclose(var2, var2_ref, atol=1e-5, rtol=1e-5)
    assert jnp.allclose(mean2, mean2_ref, atol=1e-5, rtol=1e-5)

    print("KERNEL_OK")
</pallas_src>

<mosaic_0001>
module attributes {stable_mosaic.version = 11 : i64} {
  func.func @reg_nll_kernel(%arg0: i32, %arg1: memref<1x128xf32, #tpu.memory_space<vmem>>, %arg2: memref<32x1xf32, #tpu.memory_space<vmem>>, %arg3: memref<32x1xf32, #tpu.memory_space<vmem>>, %arg4: memref<2x32xf32, #tpu.memory_space<vmem>>, %arg5: memref<2x1xf32, #tpu.memory_space<vmem>>, %arg6: memref<2x128xf32, #tpu.memory_space<vmem>>) attributes {dimension_semantics = [#tpu.dimension_semantics<parallel>], iteration_bounds = array<i64: 1>, scalar_prefetch = 0 : i64, scratch_operands = 0 : i64, tpu.core_type = #tpu.core_type<tc>, window_params = [{transform_indices = @transform_0, window_bounds = array<i64: 1, 128>}, {pipeline_mode = #tpu.pipeline_mode<synchronous>, transform_indices = @transform_1, window_bounds = array<i64: 32, 1>}, {pipeline_mode = #tpu.pipeline_mode<synchronous>, transform_indices = @transform_2, window_bounds = array<i64: 32, 1>}, {pipeline_mode = #tpu.pipeline_mode<synchronous>, transform_indices = @transform_3, window_bounds = array<i64: 2, 32>}, {pipeline_mode = #tpu.pipeline_mode<synchronous>, transform_indices = @transform_4, window_bounds = array<i64: 2, 1>}, {transform_indices = @transform_5, window_bounds = array<i64: 2, 128>}]} {
    %c0 = arith.constant 0 : index
    %c0_0 = arith.constant 0 : index
    %0 = vector.load %arg1[%c0, %c0_0] : memref<1x128xf32, #tpu.memory_space<vmem>>, vector<1x128xf32>
    %c0_1 = arith.constant 0 : index
    %c0_2 = arith.constant 0 : index
    %1 = vector.load %arg2[%c0_1, %c0_2] : memref<32x1xf32, #tpu.memory_space<vmem>>, vector<32x1xf32>
    %2 = vector.broadcast %1 : vector<32x1xf32> to vector<32x128xf32>
    %3 = vector.broadcast %0 : vector<1x128xf32> to vector<32x128xf32>
    %4 = arith.mulf %2, %3 : vector<32x128xf32>
    %c0_3 = arith.constant 0 : index
    %c0_4 = arith.constant 0 : index
    %5 = vector.load %arg3[%c0_3, %c0_4] : memref<32x1xf32, #tpu.memory_space<vmem>>, vector<32x1xf32>
    %6 = vector.broadcast %5 : vector<32x1xf32> to vector<32x128xf32>
    %7 = arith.addf %4, %6 : vector<32x128xf32>
    %cst = arith.constant 0.000000e+00 : f32
    %8 = vector.broadcast %cst : f32 to vector<32x128xf32>
    %9 = arith.maximumf %7, %8 : vector<32x128xf32>
    %c0_5 = arith.constant 0 : index
    %c0_6 = arith.constant 0 : index
    %10 = vector.load %arg4[%c0_5, %c0_6] : memref<2x32xf32, #tpu.memory_space<vmem>>, vector<2x32xf32>
    %cst_7 = arith.constant dense<0.000000e+00> : vector<2x128xf32>
    %11 = tpu.matmul %10, %9, %cst_7 {dimension_numbers = #tpu.dot_dimension_numbers<[1], [0], [0], [1], [0, 0, 1, 1], [], []>} : vector<2x32xf32>, vector<32x128xf32>, vector<2x128xf32> -> vector<2x128xf32>
    %c0_8 = arith.constant 0 : index
    %c0_9 = arith.constant 0 : index
    %12 = vector.load %arg5[%c0_8, %c0_9] : memref<2x1xf32, #tpu.memory_space<vmem>>, vector<2x1xf32>
    %13 = vector.broadcast %12 : vector<2x1xf32> to vector<2x128xf32>
    %14 = arith.addf %11, %13 : vector<2x128xf32>
    %15 = tpu.iota {dimensions = array<i32: 0>} : vector<2x128xi32>
    %c0_i32 = arith.constant 0 : i32
    %16 = vector.broadcast %c0_i32 : i32 to vector<2x128xi32>
    %17 = arith.cmpi eq, %15, %16 : vector<2x128xi32>
    %cst_10 = arith.constant 0.000000e+00 : f32
    %18 = vector.broadcast %cst_10 : f32 to vector<2x128xf32>
    %19 = arith.maximumf %14, %18 : vector<2x128xf32>
    %20 = math.absf %14 : vector<2x128xf32>
    %cst_11 = arith.constant 0.000000e+00 : f32
    %21 = vector.broadcast %cst_11 : f32 to vector<2x128xf32>
    %22 = arith.subf %21, %20 : vector<2x128xf32>
    %23 = math.exp %22 : vector<2x128xf32>
    %24 = math.log1p %23 : vector<2x128xf32>
    %25 = arith.addf %19, %24 : vector<2x128xf32>
    %cst_12 = arith.constant 9.99999997E-7 : f32
    %26 = vector.broadcast %cst_12 : f32 to vector<2x128xf32>
    %27 = arith.addf %25, %26 : vector<2x128xf32>
    %28 = arith.select %17, %27, %14 : vector<2x128xi1>, vector<2x128xf32>
    %c0_13 = arith.constant 0 : index
    %c0_14 = arith.constant 0 : index
    %29 = vector.load %arg6[%c0_13, %c0_14] : memref<2x128xf32, #tpu.memory_space<vmem>>, vector<2x128xf32>
    tpu.vector_store %arg6[%c0_13, %c0_14], %28 {strides = array<i32>} : memref<2x128xf32, #tpu.memory_space<vmem>>, vector<2x128xf32>,
    return
  }
  func.func @transform_0(%arg0: i32) -> (i32, i32) {
    %c0_i32 = arith.constant 0 : i32
    %c0_i32_0 = arith.constant 0 : i32
    return %c0_i32, %arg0 : i32, i32
  }
  func.func @transform_1(%arg0: i32) -> (i32, i32) {
    %c0_i32 = arith.constant 0 : i32
    %c0_i32_0 = arith.constant 0 : i32
    %c0_i32_1 = arith.constant 0 : i32
    return %c0_i32, %c0_i32_0 : i32, i32
  }
  func.func @transform_2(%arg0: i32) -> (i32, i32) {
    %c0_i32 = arith.constant 0 : i32
    %c0_i32_0 = arith.constant 0 : i32
    %c0_i32_1 = arith.constant 0 : i32
    return %c0_i32, %c0_i32_0 : i32, i32
  }
  func.func @transform_3(%arg0: i32) -> (i32, i32) {
    %c0_i32 = arith.constant 0 : i32
    %c0_i32_0 = arith.constant 0 : i32
    %c0_i32_1 = arith.constant 0 : i32
    return %c0_i32, %c0_i32_0 : i32, i32
  }
  func.func @transform_4(%arg0: i32) -> (i32, i32) {
    %c0_i32 = arith.constant 0 : i32
    %c0_i32_0 = arith.constant 0 : i32
    %c0_i32_1 = arith.constant 0 : i32
    return %c0_i32, %c0_i32_0 : i32, i32
  }
  func.func @transform_5(%arg0: i32) -> (i32, i32) {
    %c0_i32 = arith.constant 0 : i32
    %c0_i32_0 = arith.constant 0 : i32
    return %c0_i32, %arg0 : i32, i32
  }
}

</mosaic_0001>

<bundles_post_ra>
// kernel: tpu_custom_call.1
= control target key start
LH: loop header
LB: loop body
LE: loop exit
PB: predicated region body
PF: predicated region fallthrough
CT: control target
= control target key end

     0   :  { %v254_v2 = vmov 0   ;;  %v255_v5 = vmov 0.0   ;;  %s324_s0 = inlined_call_operand.vmem [shape: f32[1,128], index: 0, kind: input, shape index: {}]   ;;  %s325_s1 = inlined_call_operand.vmem [shape: f32[32,1], index: 1, kind: input, shape index: {}]   ;;  %s326_s2 = inlined_call_operand.vmem [shape: f32[32,1], index: 2, kind: input, shape index: {}]   ;;  %s327_s3 = inlined_call_operand.vmem [shape: f32[2,32], index: 3, kind: input, shape index: {}]   ;;  %s328_s4 = inlined_call_operand.vmem [shape: f32[2,1], index: 4, kind: input, shape index: {}]   ;;  %s329_s5 = inlined_call_operand.hbm [shape: f32[2,128], index: 5, kind: output, shape index: {}]  }
   0x1   :  { %v59_v0 = vld [vmem:[%s326_s2 + $0x18] sm:$0xff]  ;;  %227 = vset.pattern.permute.xlu1 %v254_v2  ;;  %226 = vset.pattern.permute.xlu0 %v254_v2  ;;  %v24_v3 = vld [vmem:[%s325_s1 + $0x10] sm:$0xff]  ;;  %v23_v4 = vld [vmem:[%s325_s1 + $0x8] sm:$0xff] }
   0x2   :  { %v25_v1 = vld [vmem:[%s325_s1 + $0x18] sm:$0xff]  ;;  %77 = vperm.xlu1 %227, %v59_v0   ;;  %211 = vmatprep.subr.mxu0 %v255_v5 }
   0x3   :  { %43 = vperm.xlu0 %226, %v25_v1  }
   0x4   :  { %10 = vsyncpa [#allocation3], 0  ;;  %v58_v6 = vld [vmem:[%s326_s2 + $0x10] sm:$0xff]  ;;  %v22_v7 = vld [vmem:[%s325_s1] sm:$0xff]  ;;  %vm256_vm0 = vmmov 0   ;;  %vm95_vm1 = vcmask 261120   ;;  %v169_v43 = vlaneseq }
   0x5   :  { %v57_v8 = vld [vmem:[%s326_s2 + $0x8] sm:$0xff]  ;;  %v56_v9 = vld [vmem:[%s326_s2] sm:$0xff]  ;;  %219 = vmatprep.mubr.msk.f32.mxu0 %vm256_vm0, %v255_v5 }
   0x6   :  { %33 = vperm.xlu1 %227, %v23_v4   ;;  %v89_v10 = vld [vmem:[%s328_s4] sm:$0x3]  ;;  %v170_v47 = vshrl.u32 %v169_v43, 7 }
   0x7   :  { %38 = vperm.xlu0 %226, %v24_v3   ;;  %v204_v11 = vld [vmem:[%s324_s0] ss:$0 sm:$0xff] }
   0x8   :  { %v88_v32 = vld [vmem:[%s327_s3] sm:$0x3]  ;;  %s257_s3 = smov [#allocation2]   ;;  %vm171_vm3 = vcmp.eq.s32.totalorder %v170_v47, 0 }
   0x9   :  { %s196_s4 = sshll.u32 %s257_s3, 4  ;;  %s197_s4 = int_to_ptr.vmem [resolvable:$true] %s196_s4 }
   0xa   :  { %28 = vperm.xlu1 %227, %v22_v7   ;;  %s232_s12 = scalar_lea.vmem %s197_s4, 32  ;;  %p237_p1 = scmp.lt.s32.totalorder %s197_s4, %s197_s4 }
   0xb   :  { %72 = vperm.xlu0 %226, %v58_v6   ;;  %p233_p0 = scmp.ne.s32.totalorder %s197_s4, %s232_s12  ;;  %p238_p2 = scmp.lt.s32.totalorder %s232_s12, %s232_s12 }
   0xd   :  { %p239_p3 = por %p238_p2, %p237_p1 }
   0xe   :  { %62 = vperm.xlu1 %227, %v56_v9  }
   0xf   :  { %67 = vperm.xlu0 %226, %v57_v8   ;;  %p240_p4 = pnand %p239_p3, %p233_p0 }
  0x13   :  { %92 = vperm.xlu0 %226, %v89_v10  }
  0x7d   :  { %v78_v12 = vpop.permute.xlu1 %77 }
  0x7e   :  { %v44_v13 = vpop.permute.xlu0 %43 }
  0x7f   :  { %v55_v14 = vmul.f32 %v204_v11, %v44_v13 }
  0x81   :  { %v83_v15 = vadd.f32 %v78_v12, %v55_v14  ;;  %v34_v17 = vpop.permute.xlu1 %33 }
  0x82   :  { %v39_v16 = vpop.permute.xlu0 %38  ;;  %v53_v23 = vmul.f32 %v204_v11, %v34_v17 }
  0x83   :  { %v87_v18 = vmax.f32 %v83_v15, 0.0  ;;  %v54_v19 = vmul.f32 %v204_v11, %v39_v16 }
  0x85   :  { %212 = vmatpush3.msra.mxu0 %v87_v18  ;;  %v29_v21 = vpop.permute.xlu1 %28 }
  0x86   :  { %v73_v20 = vpop.permute.xlu0 %72  ;;  %213 = vmatprep.subr.mxu0 %v255_v5  ;;  %v52_v25 = vmul.f32 %v204_v11, %v29_v21 }
  0x87   :  { %v82_v22 = vadd.f32 %v73_v20, %v54_v19 }
  0x89   :  { %v86_v24 = vmax.f32 %v82_v22, 0.0  ;;  %v63_v27 = vpop.permute.xlu1 %62 }
  0x8a   :  { %v68_v26 = vpop.permute.xlu0 %67  ;;  %v80_v29 = vadd.f32 %v63_v27, %v52_v25 }
  0x8b   :  { %v81_v28 = vadd.f32 %v68_v26, %v53_v23  ;;  %214 = vmatpush3.msra.mxu0 %v86_v24 }
  0x8c   :  { %215 = vmatprep.subr.mxu0 %v255_v5  ;;  %v84_v31 = vmax.f32 %v80_v29, 0.0 }
  0x8d   :  { %v85_v30 = vmax.f32 %v81_v28, 0.0 }
  0x8e   :  { %v93_v33 = vpop.permute.xlu0 %92 }
  0x8f   :  { %216 = vmatpush3.msra.mxu0 %v85_v30 }
  0x90   :  { %217 = vmatprep.subr.mxu0 %v255_v5 }
  0x91   :  { %218 = vmatpush3.msra.mxu0 %v84_v31 }
  0x92   :  { %220 = vmatmul.mubr.msk.f32.vlgmr.msra.gmra.mxu0 %vm95_vm1, %v88_v32 }
 0x152   :  { %v165_v34 = vpop.f32.mrf.mxu0 }
 0x153   :  { %v166_v35 = vadd.f32 %v165_v34, %v93_v33 }
 0x154   :  { %v221_v36 = vpop.f32.mrf.mxu0 }
 0x155   :  { %v173_v37 = vand.u32 2147483647, %v166_v35  ;;  %v172_v50 = vmax.f32 %v166_v35, 0.0 }
 0x157   :  { %v174_v38 = vsub.f32 0.0, %v173_v37 }
 0x159   :  { %v175_v39 = vmul.f32 1.442695, %v174_v38 }
 0x15b   :  { %228 = vpow2.f32 %v175_v39 }
 0x168   :  { %v229_v40 = vpop.eup %228 }
 0x169   :  { %v177_v41 = vadd.f32 1.0, %v229_v40  ;;  %v180_v42 = vmul.f32 -0.5, %v229_v40  ;;  %v183_v45 = vand.u32 2147483647, %v229_v40 }
 0x16b   :  { %230 = vlog2.f32 %v177_v41  ;;  %v181_v44 = vadd.f32 1.0, %v180_v42  ;;  %vm184_vm2 = vcmp.lt.f32.partialorder %v183_v45, 0.0004427343 }
 0x16d   :  { %v182_v49 = vmul.f32 %v229_v40, %v181_v44 }
 0x178   :  { %v231_v46 = vpop.eup %230 }
 0x179   :  { %v179_v48 = vmul.f32 0.6931472, %v231_v46 }
 0x17b   :  { %v185_v51 = vsel %vm184_vm2, %v182_v49, %v179_v48 }
 0x17c   :  { %v186_v52 = vadd.f32 %v185_v51, %v172_v50 }
 0x17e   :  { %v187_v53 = vadd.f32 1e-06, %v186_v52 }
 0x180   :  { %v188_v54 = vsel %vm171_vm3, %v187_v53, %v166_v35 }
 0x181   :  { %189 = vst [vmem:[#allocation2] sm:$0x3] %v188_v54 }
 0x182   :  { %243 = shalt.err (!%p240_p4)
}
 0x183   :  { %199 = dma.vmem_to_hbm [thread:$0]  %s197_s4, 32, %s329_s5, [#allocation3]  }
 0x184   :  { %252 = dma.done.wait [#allocation3], 32  }
 0x185   :  { %253 = vsyncadd [#allocation3], 4294967264 }
 0x186   :  { %203 = vsyncpa [#allocation3], 1 }

</bundles_post_ra>
